<compile_context>
chip_gen: v7x
topology: tpu7x:2x2x1
jax: 0.10.0
libtpu: 0.0.40
codegen_flags: <defaults>
</compile_context>

<pallas_src>
import jax
import jax.numpy as jnp
from jax.experimental import pallas as pl
from jax.experimental.pallas import tpu as pltpu

FEAT_DIM = 512
NUM_CLASSES = 10
LANE = 128


def _round_up(x, m):
    return ((x + m - 1) // m) * m


def _linear_classifier_kernel(x_ref, w_enc_ref, w_fc_ref, b_fc_ref, o_ref):
    """One (TM, d_in) batch tile: frozen encoder matmul + fc head, fully fused."""
    # Cast the f32 activation tile to bf16 in-register (free under the MXU).
    x_bf = x_ref[...].astype(jnp.bfloat16)
    # Frozen encoder stand-in: (TM, K) @ (K, 512) -> f32 features.
    feats = jnp.dot(x_bf, w_enc_ref[...], preferred_element_type=jnp.float32)
    # fc head: (TM, 512) @ (512, 128) + bias, lane-dense 128-wide output.
    logits = (
        jnp.dot(feats.astype(jnp.bfloat16), w_fc_ref[...],
                preferred_element_type=jnp.float32)
        + b_fc_ref[...]
    )
    o_ref[...] = logits.astype(o_ref.dtype)


def prepare_linear_classifier_params(w_enc, w_fc, b_fc):
    """One-time (init-time) padding + bf16 cast of the frozen parameters."""
    d_in, feat = w_enc.shape
    assert feat == FEAT_DIM, "encoder stand-in must produce 512-d features"
    num_classes = w_fc.shape[1]

    # Mimic torch.no_grad() / requires_grad=False on the frozen encoder.
    w_enc = jax.lax.stop_gradient(w_enc)

    k_pad = _round_up(d_in, LANE)             # reduction dim, lane-aligned
    nc_pad = _round_up(num_classes, LANE)     # lane-dense output (10 -> 128)

    w_enc_p = (jnp.zeros((k_pad, FEAT_DIM), jnp.bfloat16)
               .at[:d_in, :].set(w_enc.astype(jnp.bfloat16)))
    w_fc_p = (jnp.zeros((FEAT_DIM, nc_pad), jnp.bfloat16)
              .at[:, :num_classes].set(w_fc.astype(jnp.bfloat16)))
    b_fc_p = (jnp.zeros((1, nc_pad), jnp.float32)
              .at[0, :num_classes].set(b_fc.astype(jnp.float32)))

    return {
        "w_enc": w_enc_p,
        "w_fc": w_fc_p,
        "b_fc": b_fc_p,
        "d_in": d_in,
        "num_classes": num_classes,
    }


def linear_classifier_forward(x_nchw, params):
    """x_nchw: (B, C, H, W) float32. Returns logits (B, num_classes) float32."""
    B = x_nchw.shape[0]
    d_in = x_nchw.shape[1] * x_nchw.shape[2] * x_nchw.shape[3]
    assert d_in == params["d_in"], "input size mismatch with prepared encoder"

    w_enc_p, w_fc_p, b_fc_p = params["w_enc"], params["w_fc"], params["b_fc"]
    k_pad = w_enc_p.shape[0]
    nc_pad = w_fc_p.shape[1]
    num_classes = params["num_classes"]

    # Resident-w_enc path: w_enc (bf16) + a double-buffered f32 x tile must fit
    # comfortably under the 32 MiB scoped-VMEM budget (v5e/v6e/v7x safe).
    # TODO(synk): add a K-tiled fallback (tm>=512, tk~1024) for very large d_in.
    assert k_pad * FEAT_DIM * 2 <= 8 * 1024 * 1024, (
        "d_in too large for VMEM-resident w_enc path")

    # M tiling: tiny batches pad only to the f32 sublane granularity; big
    # batches use 256-row tiles (v6e/v7x MXU width, feeds both v7x cores).
    if B <= 128:
        tm = _round_up(B, 8)
    else:
        tm = 256
    m_pad = _round_up(B, tm)

    x_flat = x_nchw.reshape(B, d_in).astype(jnp.float32)
    if (m_pad, k_pad) != (B, d_in):
        x_p = (jnp.zeros((m_pad, k_pad), jnp.float32)
               .at[:B, :d_in].set(x_flat))
    else:
        x_p = x_flat

    grid = (m_pad // tm,)

    flops = 2 * m_pad * k_pad * FEAT_DIM + 2 * m_pad * FEAT_DIM * nc_pad
    bytes_accessed = (
        m_pad * k_pad * 4          # x (f32), read once
        + k_pad * FEAT_DIM * 2     # w_enc (bf16), invariant -> DMA'd once
        + FEAT_DIM * nc_pad * 2    # w_fc (bf16), invariant
        + nc_pad * 4               # bias (f32), invariant
        + m_pad * nc_pad * 4       # output (f32)
    )
    cost = pl.CostEstimate(
        flops=flops, transcendentals=0, bytes_accessed=bytes_accessed
    )

    out = pl.pallas_call(
        _linear_classifier_kernel,
        out_shape=jax.ShapeDtypeStruct((m_pad, nc_pad), jnp.float32),
        grid_spec=pltpu.PrefetchScalarGridSpec(
            num_scalar_prefetch=0,
            grid=grid,
            in_specs=[
                pl.BlockSpec((tm, k_pad), lambda i: (i, 0)),            # x tile (f32)
                pl.BlockSpec((k_pad, FEAT_DIM), lambda i: (0, 0)),      # w_enc (resident)
                pl.BlockSpec((FEAT_DIM, nc_pad), lambda i: (0, 0)),     # w_fc (resident)
                pl.BlockSpec((1, nc_pad), lambda i: (0, 0)),            # bias (resident)
            ],
            out_specs=pl.BlockSpec((tm, nc_pad), lambda i: (i, 0)),
        ),
        compiler_params=pltpu.CompilerParams(
            dimension_semantics=("parallel",),
            vmem_limit_bytes=32 * 1024 * 1024,  # fits v5e/v6e/v7x with headroom
        ),
        cost_estimate=cost,
    )(x_p, w_enc_p, w_fc_p, b_fc_p)

    return out[:B, :num_classes]


if __name__ == "__main__":
    key = jax.random.PRNGKey(0)
    k_x, k_we, k_wf, k_bf = jax.random.split(key, 4)

    # Small shapes consistent with the forward: NCHW input, 512-d features.
    B, C, H, W = 2, 4, 16, 16
    d_in = C * H * W  # 1024

    x = jax.random.normal(k_x, (B, C, H, W), dtype=jnp.float32)

    # Deterministic parameter init (synthetic, not loaded from checkpoint).
    w_enc = jax.random.normal(k_we, (d_in, FEAT_DIM), dtype=jnp.float32) * 0.02
    w_fc = jax.random.normal(k_wf, (FEAT_DIM, NUM_CLASSES), dtype=jnp.float32) * 0.02
    b_fc = jax.random.normal(k_bf, (NUM_CLASSES,), dtype=jnp.float32) * 0.01

    # One-time init (frozen weights), then the per-call forward.
    params = prepare_linear_classifier_params(w_enc, w_fc, b_fc)
    logits = linear_classifier_forward(x, params)
    jax.block_until_ready(logits)

    # Pure-JAX reference with matched bf16 quantization + f32 accumulation.
    x_bf = x.reshape(B, d_in).astype(jnp.bfloat16)
    feats_ref = jnp.dot(
        x_bf, w_enc.astype(jnp.bfloat16), preferred_element_type=jnp.float32
    )
    logits_ref = (
        jnp.dot(
            feats_ref.astype(jnp.bfloat16),
            w_fc.astype(jnp.bfloat16),
            preferred_element_type=jnp.float32,
        )
        + b_fc
    )

    assert logits.shape == (B, NUM_CLASSES)
    assert jnp.allclose(logits, logits_ref, atol=2e-3, rtol=2e-3)

    print("KERNEL_OK")
</pallas_src>

<mosaic_0001>
module attributes {stable_mosaic.version = 11 : i64} {
  func.func @_linear_classifier_kernel(%arg0: i32, %arg1: memref<8x1024xf32, #tpu.memory_space<vmem>>, %arg2: memref<1024x512xbf16, #tpu.memory_space<vmem>>, %arg3: memref<512x128xbf16, #tpu.memory_space<vmem>>, %arg4: memref<1x128xf32, #tpu.memory_space<vmem>>, %arg5: memref<8x128xf32, #tpu.memory_space<vmem>>) attributes {dimension_semantics = [#tpu.dimension_semantics<parallel>], iteration_bounds = array<i64: 1>, scalar_prefetch = 0 : i64, scratch_operands = 0 : i64, tpu.core_type = #tpu.core_type<tc>, window_params = [{transform_indices = @transform_0, window_bounds = array<i64: 8, 1024>}, {pipeline_mode = #tpu.pipeline_mode<synchronous>, transform_indices = @transform_1, window_bounds = array<i64: 1024, 512>}, {pipeline_mode = #tpu.pipeline_mode<synchronous>, transform_indices = @transform_2, window_bounds = array<i64: 512, 128>}, {pipeline_mode = #tpu.pipeline_mode<synchronous>, transform_indices = @transform_3, window_bounds = array<i64: 1, 128>}, {transform_indices = @transform_4, window_bounds = array<i64: 8, 128>}]} {
    %c0 = arith.constant 0 : index
    %c0_0 = arith.constant 0 : index
    %0 = vector.load %arg1[%c0, %c0_0] : memref<8x1024xf32, #tpu.memory_space<vmem>>, vector<8x1024xf32>
    %1 = arith.truncf %0 : vector<8x1024xf32> to vector<8x1024xbf16>
    %c0_1 = arith.constant 0 : index
    %c0_2 = arith.constant 0 : index
    %2 = vector.load %arg2[%c0_1, %c0_2] : memref<1024x512xbf16, #tpu.memory_space<vmem>>, vector<1024x512xbf16>
    %cst = arith.constant dense<0.000000e+00> : vector<8x512xf32>
    %3 = tpu.matmul %1, %2, %cst {dimension_numbers = #tpu.dot_dimension_numbers<[1], [0], [0], [1], [0, 0, 1, 1], [], []>} : vector<8x1024xbf16>, vector<1024x512xbf16>, vector<8x512xf32> -> vector<8x512xf32>
    %4 = arith.truncf %3 : vector<8x512xf32> to vector<8x512xbf16>
    %c0_3 = arith.constant 0 : index
    %c0_4 = arith.constant 0 : index
    %5 = vector.load %arg3[%c0_3, %c0_4] : memref<512x128xbf16, #tpu.memory_space<vmem>>, vector<512x128xbf16>
    %cst_5 = arith.constant dense<0.000000e+00> : vector<8x128xf32>
    %6 = tpu.matmul %4, %5, %cst_5 {dimension_numbers = #tpu.dot_dimension_numbers<[1], [0], [0], [1], [0, 0, 1, 1], [], []>} : vector<8x512xbf16>, vector<512x128xbf16>, vector<8x128xf32> -> vector<8x128xf32>
    %c0_6 = arith.constant 0 : index
    %c0_7 = arith.constant 0 : index
    %7 = vector.load %arg4[%c0_6, %c0_7] : memref<1x128xf32, #tpu.memory_space<vmem>>, vector<1x128xf32>
    %8 = vector.broadcast %7 : vector<1x128xf32> to vector<8x128xf32>
    %9 = arith.addf %6, %8 : vector<8x128xf32>
    %c0_8 = arith.constant 0 : index
    %c0_9 = arith.constant 0 : index
    %10 = vector.load %arg5[%c0_8, %c0_9] : memref<8x128xf32, #tpu.memory_space<vmem>>, vector<8x128xf32>
    tpu.vector_store %arg5[%c0_8, %c0_9], %9 {strides = array<i32>} : memref<8x128xf32, #tpu.memory_space<vmem>>, vector<8x128xf32>,
    return
  }
  func.func @transform_0(%arg0: i32) -> (i32, i32) {
    %c0_i32 = arith.constant 0 : i32
    %c0_i32_0 = arith.constant 0 : i32
    return %arg0, %c0_i32 : i32, i32
  }
  func.func @transform_1(%arg0: i32) -> (i32, i32) {
    %c0_i32 = arith.constant 0 : i32
    %c0_i32_0 = arith.constant 0 : i32
    %c0_i32_1 = arith.constant 0 : i32
    return %c0_i32, %c0_i32_0 : i32, i32
  }
  func.func @transform_2(%arg0: i32) -> (i32, i32) {
    %c0_i32 = arith.constant 0 : i32
    %c0_i32_0 = arith.constant 0 : i32
    %c0_i32_1 = arith.constant 0 : i32
    return %c0_i32, %c0_i32_0 : i32, i32
  }
  func.func @transform_3(%arg0: i32) -> (i32, i32) {
    %c0_i32 = arith.constant 0 : i32
    %c0_i32_0 = arith.constant 0 : i32
    %c0_i32_1 = arith.constant 0 : i32
    return %c0_i32, %c0_i32_0 : i32, i32
  }
  func.func @transform_4(%arg0: i32) -> (i32, i32) {
    %c0_i32 = arith.constant 0 : i32
    %c0_i32_0 = arith.constant 0 : i32
    return %arg0, %c0_i32 : i32, i32
  }
}

</mosaic_0001>

<bundles_post_ra>
// kernel: tpu_custom_call.1
= control target key start
LH: loop header
LB: loop body
LE: loop exit
PB: predicated region body
PF: predicated region fallthrough
CT: control target
= control target key end

     0   :  { %9 = vsyncpa [#allocation3], 0  ;;  %s3261_s0 = inlined_call_operand.hbm [shape: f32[8,1024], index: 0, kind: input, shape index: {}]   ;;  %s3262_s1 = inlined_call_operand.hbm [shape: bf16[1024,512], index: 1, kind: input, shape index: {}]   ;;  %s3263_s2 = inlined_call_operand.hbm [shape: bf16[512,128], index: 2, kind: input, shape index: {}]   ;;  %s3264_s3 = inlined_call_operand.vmem [shape: f32[1,128], index: 3, kind: input, shape index: {}]   ;;  %s3265_s4 = inlined_call_operand.hbm [shape: f32[8,128], index: 4, kind: output, shape index: {}]  }
   0x1   :  { %10 = vsyncpa [#allocation6], 0 }
   0x2   :  { %11 = vsyncpa [#allocation4], 0  ;;  %s3177_s15 = smov [#allocation5]   ;;  %s3083_s19 = scalar_lea.hbm %s3262_s1, 32768 }
   0x3   :  { %s27_s16 = sshll.u32 %s3177_s15, 4  ;;  %p3084_p0 = scmp.ne.s32.totalorder %s3262_s1, %s3083_s19  ;;  %s28_s16 = int_to_ptr.vmem [resolvable:$true] %s27_s16 }
   0x4   :  { %p3087_p1 = scmp.lt.u32.totalorder %s3083_s19, %s3262_s1 }
   0x6   :  { %p3089_p2 = pnand %p3087_p1, %p3084_p0 }
   0x8   :  { %3092 = shalt.err (!%p3089_p2)
}
   0x9   :  { %s3093_s24 = scalar_lea.vmem %s28_s16, 32768  ;;  %p3098_p4 = scmp.lt.s32.totalorder %s28_s16, %s28_s16 }
   0xa   :  { %p3094_p3 = scmp.ne.s32.totalorder %s28_s16, %s3093_s24  ;;  %p3099_p5 = scmp.lt.s32.totalorder %s3093_s24, %s3093_s24 }
   0xc   :  { %p3100_p6 = por %p3099_p5, %p3098_p4 }
   0xe   :  { %p3101_p7 = pnand %p3100_p6, %p3094_p3 }
  0x10   :  { %3104 = shalt.err (!%p3101_p7)
}
  0x11   :  { %s3178_s25 = smov 256   ;;  %s3179_s26 = smov 16  }
  0x12   :  { %33 = dma.hbm_to_vmem [thread:$0]  %s3262_s1, 32768, %s28_s16, [#allocation6], %s3178_s25, %s3178_s25, %s3179_s26  }
  0x13   :  { %s3180_s29 = smov [#allocation2]   ;;  %s3181_s5 = smov [#allocation7]  }
  0x14   :  { %s18_s30 = sshll.u32 %s3180_s29, 4  ;;  %s39_s6 = sshll.u32 %s3181_s5, 4  ;;  %s19_s30 = int_to_ptr.vmem [resolvable:$true] %s18_s30  ;;  %s40_s6 = int_to_ptr.vmem [resolvable:$true] %s39_s6 }
  0x15   :  { %s3105_s9 = scalar_lea.hbm %s3261_s0, 1024 }
  0x16   :  { %p3106_p8 = scmp.ne.s32.totalorder %s3261_s0, %s3105_s9  ;;  %p3109_p9 = scmp.lt.u32.totalorder %s3105_s9, %s3261_s0 }
  0x18   :  { %p3111_p10 = pnand %p3109_p9, %p3106_p8 }
  0x1a   :  { %3114 = shalt.err (!%p3111_p10)
}
  0x1b   :  { %s3115_s1 = scalar_lea.vmem %s19_s30, 1024  ;;  %p3120_p12 = scmp.lt.s32.totalorder %s19_s30, %s19_s30 }
  0x1c   :  { %p3116_p11 = scmp.ne.s32.totalorder %s19_s30, %s3115_s1  ;;  %p3121_p13 = scmp.lt.s32.totalorder %s3115_s1, %s3115_s1 }
  0x1e   :  { %p3122_p0 = por %p3121_p13, %p3120_p12 }
  0x20   :  { %p3123_p1 = pnand %p3122_p0, %p3116_p11 }
  0x22   :  { %3126 = shalt.err (!%p3123_p1)
}
  0x23   :  { %21 = dma.hbm_to_vmem [thread:$0]  %s3261_s0, 1024, %s19_s30, [#allocation3]  }
  0x24   :  { %s3127_s18 = scalar_lea.hbm %s3263_s2, 4096 }
  0x25   :  { %p3128_p2 = scmp.ne.s32.totalorder %s3263_s2, %s3127_s18  ;;  %p3131_p3 = scmp.lt.u32.totalorder %s3127_s18, %s3263_s2 }
  0x27   :  { %p3133_p4 = pnand %p3131_p3, %p3128_p2 }
  0x29   :  { %3136 = shalt.err (!%p3133_p4)
}
  0x2a   :  { %s3137_s23 = scalar_lea.vmem %s40_s6, 4096  ;;  %p3142_p6 = scmp.lt.s32.totalorder %s40_s6, %s40_s6 }
  0x2b   :  { %p3138_p5 = scmp.ne.s32.totalorder %s40_s6, %s3137_s23  ;;  %p3143_p7 = scmp.lt.s32.totalorder %s3137_s23, %s3137_s23 }
  0x2d   :  { %p3144_p8 = por %p3143_p7, %p3142_p6 }
  0x2f   :  { %p3145_p9 = pnand %p3144_p8, %p3138_p5 }
  0x31   :  { %3148 = shalt.err (!%p3145_p9)
}
  0x32   :  { %s3182_s0 = smov 64   ;;  %s3183_s24 = smov 4  }
  0x33   :  { %45 = dma.hbm_to_vmem [thread:$0]  %s3263_s2, 4096, %s40_s6, [#allocation6], %s3182_s0, %s3182_s0, %s3183_s24  }
  0x34   :  { %3171 = dma.done.wait [#allocation3], 1024  }
  0x35   :  { %3172 = vsyncadd [#allocation3], 4294966272 }
  0x36   :  { %3173 = dma.done.wait [#allocation6], 36864  }
  0x37   :  { %3174 = vsyncadd [#allocation6], 4294930432  ;;  %v2667_v0 = vld [vmem:[#allocation5 + $0x4] ss:$16 sps:$4 sm:$0xff]   ;;  %v2669_v1 = vld [vmem:[#allocation5 + $0xc] ss:$16 sps:$4 sm:$0xff]  }
  0x38   :  { %1610 = vmatprep.subr.bf16.mxu0 %v2667_v0  ;;  %v2671_v2 = vld [vmem:[#allocation5] ss:$16 sps:$4 sm:$0xff]   ;;  %v2672_v3 = vld [vmem:[#allocation5 + $0x8] ss:$16 sps:$4 sm:$0xff]   ;;  %1774 = vmatprep.subr.bf16.mxu1 %v2669_v1  ;;  %v2673_v4 = vld [vmem:[#allocation5 + $0x24] ss:$16 sps:$4 sm:$0xff]  }
  0x39   :  { %1611 = vmatpush1.bf16.msra.mxu0 %v2671_v2  ;;  %1775 = vmatpush1.bf16.msra.mxu1 %v2672_v3  ;;  %v2675_v5 = vld [vmem:[#allocation5 + $0x2c] ss:$16 sps:$4 sm:$0xff]   ;;  %v2677_v6 = vld [vmem:[#allocation5 + $0x20] ss:$16 sps:$4 sm:$0xff]   ;;  %v2678_v7 = vld [vmem:[#allocation5 + $0x28] ss:$16 sps:$4 sm:$0xff]  }
  0x3a   :  { %1612 = vmatprep.subr.bf16.mxu0 %v2673_v4  ;;  %1776 = vmatprep.subr.bf16.mxu1 %v2675_v5  ;;  %v2679_v8 = vld [vmem:[#allocation5 + $0x44] ss:$16 sps:$4 sm:$0xff]   ;;  %v2681_v9 = vld [vmem:[#allocation5 + $0x4c] ss:$16 sps:$4 sm:$0xff]   ;;  %v2683_v10 = vld [vmem:[#allocation5 + $0x40] ss:$16 sps:$4 sm:$0xff]  }
  0x3b   :  { %v2684_v11 = vld [vmem:[#allocation5 + $0x48] ss:$16 sps:$4 sm:$0xff]   ;;  %v2685_v12 = vld [vmem:[#allocation5 + $0x64] ss:$16 sps:$4 sm:$0xff]   ;;  %v2687_v13 = vld [vmem:[#allocation5 + $0x6c] ss:$16 sps:$4 sm:$0xff]  }
  0x3c   :  { %v2689_v14 = vld [vmem:[#allocation5 + $0x60] ss:$16 sps:$4 sm:$0xff]   ;;  %v2690_v15 = vld [vmem:[#allocation5 + $0x68] ss:$16 sps:$4 sm:$0xff]   ;;  %v2691_v16 = vld [vmem:[#allocation5 + $0x84] ss:$16 sps:$4 sm:$0xff]  }
  0x3d   :  { %1613 = vmatpush1.bf16.msra.mxu0 %v2677_v6  ;;  %1777 = vmatpush1.bf16.msra.mxu1 %v2678_v7  ;;  %v2693_v17 = vld [vmem:[#allocation5 + $0x8c] ss:$16 sps:$4 sm:$0xff]   ;;  %v2695_v18 = vld [vmem:[#allocation5 + $0x80] ss:$16 sps:$4 sm:$0xff]   ;;  %v2696_v19 = vld [vmem:[#allocation5 + $0x88] ss:$16 sps:$4 sm:$0xff]  }
  0x3e   :  { %1614 = vmatprep.subr.bf16.mxu0 %v2679_v8  ;;  %1778 = vmatprep.subr.bf16.mxu1 %v2681_v9  ;;  %v2697_v20 = vld [vmem:[#allocation5 + $0xa4] ss:$16 sps:$4 sm:$0xff]   ;;  %v2699_v21 = vld [vmem:[#allocation5 + $0xac] ss:$16 sps:$4 sm:$0xff]   ;;  %v2701_v22 = vld [vmem:[#allocation5 + $0xa0] ss:$16 sps:$4 sm:$0xff]  }
  0x3f   :  { %v2702_v23 = vld [vmem:[#allocation5 + $0xa8] ss:$16 sps:$4 sm:$0xff]   ;;  %v2703_v24 = vld [vmem:[#allocation5 + $0xc4] ss:$16 sps:$4 sm:$0xff]   ;;  %v2705_v25 = vld [vmem:[#allocation5 + $0xcc] ss:$16 sps:$4 sm:$0xff]  }
  0x40   :  { %v2707_v26 = vld [vmem:[#allocation5 + $0xc0] ss:$16 sps:$4 sm:$0xff]   ;;  %v2708_v27 = vld [vmem:[#allocation5 + $0xc8] ss:$16 sps:$4 sm:$0xff]   ;;  %v2709_v28 = vld [vmem:[#allocation5 + $0xe4] ss:$16 sps:$4 sm:$0xff]  }
  0x41   :  { %1615 = vmatpush1.bf16.msra.mxu0 %v2683_v10  ;;  %1779 = vmatpush1.bf16.msra.mxu1 %v2684_v11  ;;  %v2711_v29 = vld [vmem:[#allocation5 + $0xec] ss:$16 sps:$4 sm:$0xff]   ;;  %v2713_v30 = vld [vmem:[#allocation5 + $0xe0] ss:$16 sps:$4 sm:$0xff]   ;;  %v2714_v31 = vld [vmem:[#allocation5 + $0xe8] ss:$16 sps:$4 sm:$0xff]  }
  0x42   :  { %1616 = vmatprep.subr.bf16.mxu0 %v2685_v12  ;;  %1780 = vmatprep.subr.bf16.mxu1 %v2687_v13  ;;  %v2715_v32 = vld [vmem:[#allocation5 + $0x104] ss:$16 sps:$4 sm:$0xff]   ;;  %v2717_v33 = vld [vmem:[#allocation5 + $0x10c] ss:$16 sps:$4 sm:$0xff]   ;;  %v2719_v34 = vld [vmem:[#allocation5 + $0x100] ss:$16 sps:$4 sm:$0xff]  }
  0x43   :  { %v2720_v35 = vld [vmem:[#allocation5 + $0x108] ss:$16 sps:$4 sm:$0xff]   ;;  %v2721_v36 = vld [vmem:[#allocation5 + $0x124] ss:$16 sps:$4 sm:$0xff]   ;;  %v2723_v37 = vld [vmem:[#allocation5 + $0x12c] ss:$16 sps:$4 sm:$0xff]  }
  0x44   :  { %v2725_v38 = vld [vmem:[#allocation5 + $0x120] ss:$16 sps:$4 sm:$0xff]   ;;  %v2726_v39 = vld [vmem:[#allocation5 + $0x128] ss:$16 sps:$4 sm:$0xff]   ;;  %v2727_v40 = vld [vmem:[#allocation5 + $0x144] ss:$16 sps:$4 sm:$0xff]  }
  0x45   :  { %1617 = vmatpush1.bf16.msra.mxu0 %v2689_v14  ;;  %1781 = vmatpush1.bf16.msra.mxu1 %v2690_v15  ;;  %v2729_v41 = vld [vmem:[#allocation5 + $0x14c] ss:$16 sps:$4 sm:$0xff]   ;;  %v2731_v42 = vld [vmem:[#allocation5 + $0x140] ss:$16 sps:$4 sm:$0xff]   ;;  %v2732_v43 = vld [vmem:[#allocation5 + $0x148] ss:$16 sps:$4 sm:$0xff]  }
  0x46   :  { %1618 = vmatprep.subr.bf16.mxu0 %v2691_v16  ;;  %1782 = vmatprep.subr.bf16.mxu1 %v2693_v17  ;;  %v2733_v44 = vld [vmem:[#allocation5 + $0x164] ss:$16 sps:$4 sm:$0xff]   ;;  %v2735_v45 = vld [vmem:[#allocation5 + $0x16c] ss:$16 sps:$4 sm:$0xff]   ;;  %v2737_v47 = vld [vmem:[#allocation5 + $0x160] ss:$16 sps:$4 sm:$0xff]  }
  0x47   :  { %v59_v46 = vld [vmem:[#allocation2 + $0x8] sm:$0xff]  ;;  %v2739_v50 = vld [vmem:[#allocation5 + $0x184] ss:$16 sps:$4 sm:$0xff]   ;;  %v2743_v52 = vld [vmem:[#allocation5 + $0x180] ss:$16 sps:$4 sm:$0xff]   ;;  %s3184_s28 = smov [#allocation8]  }
  0x48   :  { %v67_v48 = vpack.c.bf16 %v59_v46, %v59_v46  ;;  %v2738_v49 = vld [vmem:[#allocation5 + $0x168] ss:$16 sps:$4 sm:$0xff]   ;;  %v2741_v51 = vld [vmem:[#allocation5 + $0x18c] ss:$16 sps:$4 sm:$0xff]   ;;  %v2745_v54 = vld [vmem:[#allocation5 + $0x1a4] ss:$16 sps:$4 sm:$0xff]  }
  0x49   :  { %1619 = vmatpush1.bf16.msra.mxu0 %v2695_v18  ;;  %1783 = vmatpush1.bf16.msra.mxu1 %v2696_v19  ;;  %v2744_v53 = vld [vmem:[#allocation5 + $0x188] ss:$16 sps:$4 sm:$0xff]   ;;  %v2747_v55 = vld [vmem:[#allocation5 + $0x1ac] ss:$16 sps:$4 sm:$0xff]   ;;  %v2749_v56 = vld [vmem:[#allocation5 + $0x1a0] ss:$16 sps:$4 sm:$0xff]  }
  0x4a   :  { %1620 = vmatprep.subr.bf16.mxu0 %v2697_v20  ;;  %1784 = vmatprep.subr.bf16.mxu1 %v2699_v21  ;;  %v2750_v57 = vld [vmem:[#allocation5 + $0x1a8] ss:$16 sps:$4 sm:$0xff]   ;;  %v2751_v58 = vld [vmem:[#allocation5 + $0x1c4] ss:$16 sps:$4 sm:$0xff]   ;;  %v2753_v59 = vld [vmem:[#allocation5 + $0x1cc] ss:$16 sps:$4 sm:$0xff]  }
  0x4b   :  { %1642 = vmatprep.mubr.bf16.mxu0 %v67_v48  ;;  %1806 = vmatprep.mubr.bf16.mxu1 %v67_v48  ;;  %v2755_v60 = vld [vmem:[#allocation5 + $0x1c0] ss:$16 sps:$4 sm:$0xff]   ;;  %v2756_v61 = vld [vmem:[#allocation5 + $0x1c8] ss:$16 sps:$4 sm:$0xff]   ;;  %v2757_v62 = vld [vmem:[#allocation5 + $0x1e4] ss:$16 sps:$4 sm:$0xff]  }
  0x4c   :  { %v2759_v63 = vld [vmem:[#allocation5 + $0x1ec] ss:$16 sps:$4 sm:$0xff]   ;;  %v2761_v0 = vld [vmem:[#allocation5 + $0x1e0] ss:$16 sps:$4 sm:$0xff]   ;;  %v2762_v1 = vld [vmem:[#allocation5 + $0x1e8] ss:$16 sps:$4 sm:$0xff]  }
  0x4d   :  { %1621 = vmatpush1.bf16.msra.mxu0 %v2701_v22  ;;  %1785 = vmatpush1.bf16.msra.mxu1 %v2702_v23  ;;  %v58_v2 = vld [vmem:[#allocation2] sm:$0xff]  ;;  %v2768_v4 = vld [vmem:[#allocation5 + $0x20c] ss:$16 sps:$4 sm:$0xff]   ;;  %v2766_v7 = vld [vmem:[#allocation5 + $0x208] ss:$16 sps:$4 sm:$0xff]   ;;  %s2292_s29 = sshll.u32 %s3184_s28, 4  ;;  %s2293_s29 = int_to_ptr.vmem [resolvable:$true] %s2292_s29 }
  0x4e   :  { %1622 = vmatprep.subr.bf16.mxu0 %v2703_v24  ;;  %1786 = vmatprep.subr.bf16.mxu1 %v2705_v25  ;;  %v2765_v3 = vld [vmem:[#allocation5 + $0x204] ss:$16 sps:$4 sm:$0xff]   ;;  %v66_v5 = vpack.c.bf16 %v58_v2, %v58_v2  ;;  %v2763_v6 = vld [vmem:[#allocation5 + $0x200] ss:$16 sps:$4 sm:$0xff]   ;;  %v2774_v9 = vld [vmem:[#allocation5 + $0x22c] ss:$16 sps:$4 sm:$0xff]   ;;  %p3154_p11 = scmp.lt.s32.totalorder %s2293_s29, %s2293_s29 }
  0x4f   :  { %v2771_v8 = vld [vmem:[#allocation5 + $0x224] ss:$16 sps:$4 sm:$0xff]   ;;  %v2769_v10 = vld [vmem:[#allocation5 + $0x220] ss:$16 sps:$4 sm:$0xff]   ;;  %v2772_v11 = vld [vmem:[#allocation5 + $0x228] ss:$16 sps:$4 sm:$0xff]  }
  0x50   :  { %v2777_v12 = vld [vmem:[#allocation5 + $0x244] ss:$16 sps:$4 sm:$0xff]   ;;  %v2780_v13 = vld [vmem:[#allocation5 + $0x24c] ss:$16 sps:$4 sm:$0xff]   ;;  %v2775_v14 = vld [vmem:[#allocation5 + $0x240] ss:$16 sps:$4 sm:$0xff]  }
  0x51   :  { %1623 = vmatpush1.bf16.msra.mxu0 %v2707_v26  ;;  %1787 = vmatpush1.bf16.msra.mxu1 %v2708_v27  ;;  %v2778_v15 = vld [vmem:[#allocation5 + $0x248] ss:$16 sps:$4 sm:$0xff]   ;;  %v2783_v16 = vld [vmem:[#allocation5 + $0x264] ss:$16 sps:$4 sm:$0xff]   ;;  %v2786_v17 = vld [vmem:[#allocation5 + $0x26c] ss:$16 sps:$4 sm:$0xff]  }
  0x52   :  { %1624 = vmatprep.subr.bf16.mxu0 %v2709_v28  ;;  %1788 = vmatprep.subr.bf16.mxu1 %v2711_v29  ;;  %v2781_v18 = vld [vmem:[#allocation5 + $0x260] ss:$16 sps:$4 sm:$0xff]   ;;  %v2784_v19 = vld [vmem:[#allocation5 + $0x268] ss:$16 sps:$4 sm:$0xff]   ;;  %v2789_v20 = vld [vmem:[#allocation5 + $0x284] ss:$16 sps:$4 sm:$0xff]  }
  0x53   :  { %v2792_v21 = vld [vmem:[#allocation5 + $0x28c] ss:$16 sps:$4 sm:$0xff]   ;;  %v2787_v22 = vld [vmem:[#allocation5 + $0x280] ss:$16 sps:$4 sm:$0xff]   ;;  %v2790_v23 = vld [vmem:[#allocation5 + $0x288] ss:$16 sps:$4 sm:$0xff]  }
  0x54   :  { %v2795_v24 = vld [vmem:[#allocation5 + $0x2a4] ss:$16 sps:$4 sm:$0xff]   ;;  %v2798_v25 = vld [vmem:[#allocation5 + $0x2ac] ss:$16 sps:$4 sm:$0xff]   ;;  %v2793_v26 = vld [vmem:[#allocation5 + $0x2a0] ss:$16 sps:$4 sm:$0xff]  }
  0x55   :  { %1625 = vmatpush1.bf16.msra.mxu0 %v2713_v30  ;;  %1789 = vmatpush1.bf16.msra.mxu1 %v2714_v31  ;;  %v2796_v27 = vld [vmem:[#allocation5 + $0x2a8] ss:$16 sps:$4 sm:$0xff]   ;;  %v2801_v28 = vld [vmem:[#allocation5 + $0x2c4] ss:$16 sps:$4 sm:$0xff]   ;;  %v2804_v29 = vld [vmem:[#allocation5 + $0x2cc] ss:$16 sps:$4 sm:$0xff]  }
  0x56   :  { %1626 = vmatprep.subr.bf16.mxu0 %v2715_v32  ;;  %1790 = vmatprep.subr.bf16.mxu1 %v2717_v33  ;;  %v61_v30 = vld [vmem:[#allocation2 + $0x18] sm:$0xff]  ;;  %v2799_v31 = vld [vmem:[#allocation5 + $0x2c0] ss:$16 sps:$4 sm:$0xff]   ;;  %v2825_v46 = vld [vmem:[#allocation5 + $0x344] ss:$16 sps:$4 sm:$0xff]   ;;  %s3149_s30 = scalar_lea.vmem %s2293_s29, 128 }
  0x57   :  { %v69_v32 = vpack.c.bf16 %v61_v30, %v61_v30  ;;  %v2802_v33 = vld [vmem:[#allocation5 + $0x2c8] ss:$16 sps:$4 sm:$0xff]   ;;  %v2823_v48 = vld [vmem:[#allocation5 + $0x340] ss:$16 sps:$4 sm:$0xff]   ;;  %v2855_v2 = vld [vmem:[#allocation5 + $0x3e4] ss:$16 sps:$4 sm:$0xff]   ;;  %p3150_p10 = scmp.ne.s32.totalorder %s2293_s29, %s3149_s30  ;;  %p3155_p12 = scmp.lt.s32.totalorder %s3149_s30, %s3149_s30 }
  0x58   :  { %v2891_v30 = vld [vmem:[#allocation5 + $0x4a4] ss:$16 sps:$4 sm:$0xff]  }
  0x59   :  { %1627 = vmatpush1.bf16.msra.mxu0 %v2719_v34  ;;  %1791 = vmatpush1.bf16.msra.mxu1 %v2720_v35  ;;  %v2807_v34 = vld [vmem:[#allocation5 + $0x2e4] ss:$16 sps:$4 sm:$0xff]   ;;  %v2810_v35 = vld [vmem:[#allocation5 + $0x2ec] ss:$16 sps:$4 sm:$0xff]   ;;  %p3156_p13 = por %p3155_p12, %p3154_p11 }
  0x5a   :  { %1628 = vmatprep.subr.bf16.mxu0 %v2721_v36  ;;  %1792 = vmatprep.subr.bf16.mxu1 %v2723_v37  ;;  %v2805_v36 = vld [vmem:[#allocation5 + $0x2e0] ss:$16 sps:$4 sm:$0xff]   ;;  %v2808_v37 = vld [vmem:[#allocation5 + $0x2e8] ss:$16 sps:$4 sm:$0xff]  }
  0x5b   :  { %p3157_p0 = pnand %p3156_p13, %p3150_p10 }
  0x5d   :  { %1629 = vmatpush1.bf16.msra.mxu0 %v2725_v38  ;;  %1793 = vmatpush1.bf16.msra.mxu1 %v2726_v39  ;;  %v2813_v38 = vld [vmem:[#allocation5 + $0x304] ss:$16 sps:$4 sm:$0xff]   ;;  %v2816_v39 = vld [vmem:[#allocation5 + $0x30c] ss:$16 sps:$4 sm:$0xff]  }
  0x5e   :  { %1630 = vmatprep.subr.bf16.mxu0 %v2727_v40  ;;  %1794 = vmatprep.subr.bf16.mxu1 %v2729_v41  ;;  %v2811_v40 = vld [vmem:[#allocation5 + $0x300] ss:$16 sps:$4 sm:$0xff]   ;;  %v2814_v41 = vld [vmem:[#allocation5 + $0x308] ss:$16 sps:$4 sm:$0xff]  }
  0x61   :  { %1631 = vmatpush1.bf16.msra.mxu0 %v2731_v42  ;;  %1795 = vmatpush1.bf16.msra.mxu1 %v2732_v43  ;;  %v2819_v42 = vld [vmem:[#allocation5 + $0x324] ss:$16 sps:$4 sm:$0xff]   ;;  %v2822_v43 = vld [vmem:[#allocation5 + $0x32c] ss:$16 sps:$4 sm:$0xff]  }
  0x62   :  { %1632 = vmatprep.subr.bf16.mxu0 %v2733_v44  ;;  %1796 = vmatprep.subr.bf16.mxu1 %v2735_v45  ;;  %v2817_v44 = vld [vmem:[#allocation5 + $0x320] ss:$16 sps:$4 sm:$0xff]   ;;  %v2820_v45 = vld [vmem:[#allocation5 + $0x328] ss:$16 sps:$4 sm:$0xff]  }
  0x65   :  { %1633 = vmatpush1.bf16.msra.mxu0 %v2737_v47  ;;  %1797 = vmatpush1.bf16.msra.mxu1 %v2738_v49  ;;  %v2828_v47 = vld [vmem:[#allocation5 + $0x34c] ss:$16 sps:$4 sm:$0xff]   ;;  %v2826_v49 = vld [vmem:[#allocation5 + $0x348] ss:$16 sps:$4 sm:$0xff]  }
  0x66   :  { %1634 = vmatprep.subr.bf16.mxu0 %v2739_v50  ;;  %1798 = vmatprep.subr.bf16.mxu1 %v2741_v51  ;;  %v2831_v50 = vld [vmem:[#allocation5 + $0x364] ss:$16 sps:$4 sm:$0xff]   ;;  %v2834_v51 = vld [vmem:[#allocation5 + $0x36c] ss:$16 sps:$4 sm:$0xff]  }
  0x69   :  { %1635 = vmatpush1.bf16.msra.mxu0 %v2743_v52  ;;  %1799 = vmatpush1.bf16.msra.mxu1 %v2744_v53  ;;  %v2829_v52 = vld [vmem:[#allocation5 + $0x360] ss:$16 sps:$4 sm:$0xff]   ;;  %v2832_v53 = vld [vmem:[#allocation5 + $0x368] ss:$16 sps:$4 sm:$0xff]  }
  0x6a   :  { %1636 = vmatprep.subr.bf16.mxu0 %v2745_v54  ;;  %1800 = vmatprep.subr.bf16.mxu1 %v2747_v55  ;;  %v2837_v54 = vld [vmem:[#allocation5 + $0x384] ss:$16 sps:$4 sm:$0xff]   ;;  %v2840_v55 = vld [vmem:[#allocation5 + $0x38c] ss:$16 sps:$4 sm:$0xff]  }
  0x6d   :  { %1637 = vmatpush1.bf16.msra.mxu0 %v2749_v56  ;;  %1801 = vmatpush1.bf16.msra.mxu1 %v2750_v57  ;;  %v2835_v56 = vld [vmem:[#allocation5 + $0x380] ss:$16 sps:$4 sm:$0xff]   ;;  %v2838_v57 = vld [vmem:[#allocation5 + $0x388] ss:$16 sps:$4 sm:$0xff]  }
  0x6e   :  { %1638 = vmatprep.subr.bf16.mxu0 %v2751_v58  ;;  %1802 = vmatprep.subr.bf16.mxu1 %v2753_v59  ;;  %v2843_v58 = vld [vmem:[#allocation5 + $0x3a4] ss:$16 sps:$4 sm:$0xff]   ;;  %v2846_v59 = vld [vmem:[#allocation5 + $0x3ac] ss:$16 sps:$4 sm:$0xff]  }
  0x71   :  { %1639 = vmatpush1.bf16.msra.mxu0 %v2755_v60  ;;  %1803 = vmatpush1.bf16.msra.mxu1 %v2756_v61  ;;  %v2841_v60 = vld [vmem:[#allocation5 + $0x3a0] ss:$16 sps:$4 sm:$0xff]   ;;  %v2844_v61 = vld [vmem:[#allocation5 + $0x3a8] ss:$16 sps:$4 sm:$0xff]  }
  0x72   :  { %1640 = vmatprep.subr.bf16.mxu0 %v2757_v62  ;;  %1804 = vmatprep.subr.bf16.mxu1 %v2759_v63  ;;  %v2849_v62 = vld [vmem:[#allocation5 + $0x3c4] ss:$16 sps:$4 sm:$0xff]   ;;  %v2852_v63 = vld [vmem:[#allocation5 + $0x3cc] ss:$16 sps:$4 sm:$0xff]  }
  0x75   :  { %1641 = vmatpush1.bf16.msra.mxu0 %v2761_v0  ;;  %1805 = vmatpush1.bf16.msra.mxu1 %v2762_v1  ;;  %v2847_v0 = vld [vmem:[#allocation5 + $0x3c0] ss:$16 sps:$4 sm:$0xff]   ;;  %v2850_v1 = vld [vmem:[#allocation5 + $0x3c8] ss:$16 sps:$4 sm:$0xff]  }
  0x76   :  { %1651 = vmatprep.subr.bf16.mxu0 %v2765_v3  ;;  %1815 = vmatprep.subr.bf16.mxu1 %v2768_v4  ;;  %v2858_v3 = vld [vmem:[#allocation5 + $0x3ec] ss:$16 sps:$4 sm:$0xff]   ;;  %v2853_v4 = vld [vmem:[#allocation5 + $0x3e0] ss:$16 sps:$4 sm:$0xff]  }
  0x78   :  { %1643 = vmatmul.mubr.bf16.vlgmr.msra.gmra.mrb[0].mxu0 %v66_v5  ;;  %1807 = vmatmul.mubr.bf16.vlgmr.msra.gmra.mrb[0].mxu1 %v66_v5  ;;  %v2856_v5 = vld [vmem:[#allocation5 + $0x3e8] ss:$16 sps:$4 sm:$0xff]  }
  0x79   :  { %1652 = vmatpush1.bf16.msra.mxu0 %v2763_v6  ;;  %1816 = vmatpush1.bf16.msra.mxu1 %v2766_v7  ;;  %v2861_v6 = vld [vmem:[#allocation5 + $0x404] ss:$16 sps:$4 sm:$0xff]  }
  0x7a   :  { %1653 = vmatprep.subr.bf16.mxu0 %v2771_v8  ;;  %1817 = vmatprep.subr.bf16.mxu1 %v2774_v9  ;;  %v60_v7 = vld [vmem:[#allocation2 + $0x10] sm:$0xff]  ;;  %v2864_v8 = vld [vmem:[#allocation5 + $0x40c] ss:$16 sps:$4 sm:$0xff]  }
  0x7b   :  { %1683 = vmatprep.mubr.bf16.mxu0 %v69_v32  ;;  %1847 = vmatprep.mubr.bf16.mxu1 %v69_v32  ;;  %v2859_v9 = vld [vmem:[#allocation5 + $0x400] ss:$16 sps:$4 sm:$0xff]  }
  0x7c   :  { %v2889_v32 = vld [vmem:[#allocation5 + $0x4a0] ss:$16 sps:$4 sm:$0xff]  }
  0x7d   :  { %1654 = vmatpush1.bf16.msra.mxu0 %v2769_v10  ;;  %1818 = vmatpush1.bf16.msra.mxu1 %v2772_v11  ;;  %v2862_v10 = vld [vmem:[#allocation5 + $0x408] ss:$16 sps:$4 sm:$0xff]   ;;  %v68_v11 = vpack.c.bf16 %v60_v7, %v60_v7  ;;  %v2954_v7 = vld [vmem:[#allocation5 + $0x5ec] ss:$16 sps:$4 sm:$0xff]  }
  0x7e   :  { %1655 = vmatprep.subr.bf16.mxu0 %v2777_v12  ;;  %1819 = vmatprep.subr.bf16.mxu1 %v2780_v13  ;;  %v2867_v12 = vld [vmem:[#allocation5 + $0x424] ss:$16 sps:$4 sm:$0xff]   ;;  %v2870_v13 = vld [vmem:[#allocation5 + $0x42c] ss:$16 sps:$4 sm:$0xff]  }
  0x81   :  { %1656 = vmatpush1.bf16.msra.mxu0 %v2775_v14  ;;  %1820 = vmatpush1.bf16.msra.mxu1 %v2778_v15  ;;  %v63_v14 = vld [vmem:[#allocation2 + $0x28] sm:$0xff] }
  0x82   :  { %1657 = vmatprep.subr.bf16.mxu0 %v2783_v16  ;;  %1821 = vmatprep.subr.bf16.mxu1 %v2786_v17  ;;  %v71_v15 = vpack.c.bf16 %v63_v14, %v63_v14  ;;  %v2865_v16 = vld [vmem:[#allocation5 + $0x420] ss:$16 sps:$4 sm:$0xff]   ;;  %v2868_v17 = vld [vmem:[#allocation5 + $0x428] ss:$16 sps:$4 sm:$0xff]  }
  0x83   :  { %v2958_v14 = vld [vmem:[#allocation5 + $0x608] ss:$16 sps:$4 sm:$0xff]  }
  0x85   :  { %1658 = vmatpush1.bf16.msra.mxu0 %v2781_v18  ;;  %1822 = vmatpush1.bf16.msra.mxu1 %v2784_v19  ;;  %v2873_v18 = vld [vmem:[#allocation5 + $0x444] ss:$16 sps:$4 sm:$0xff]   ;;  %v2876_v19 = vld [vmem:[#allocation5 + $0x44c] ss:$16 sps:$4 sm:$0xff]  }
  0x86   :  { %1659 = vmatprep.subr.bf16.mxu0 %v2789_v20  ;;  %1823 = vmatprep.subr.bf16.mxu1 %v2792_v21  ;;  %v2871_v20 = vld [vmem:[#allocation5 + $0x440] ss:$16 sps:$4 sm:$0xff]   ;;  %v2874_v21 = vld [vmem:[#allocation5 + $0x448] ss:$16 sps:$4 sm:$0xff]  }
  0x89   :  { %1660 = vmatpush1.bf16.msra.mxu0 %v2787_v22  ;;  %1824 = vmatpush1.bf16.msra.mxu1 %v2790_v23  ;;  %v2879_v22 = vld [vmem:[#allocation5 + $0x464] ss:$16 sps:$4 sm:$0xff]   ;;  %v2882_v23 = vld [vmem:[#allocation5 + $0x46c] ss:$16 sps:$4 sm:$0xff]  }
  0x8a   :  { %1661 = vmatprep.subr.bf16.mxu0 %v2795_v24  ;;  %1825 = vmatprep.subr.bf16.mxu1 %v2798_v25  ;;  %v2877_v24 = vld [vmem:[#allocation5 + $0x460] ss:$16 sps:$4 sm:$0xff]   ;;  %v2880_v25 = vld [vmem:[#allocation5 + $0x468] ss:$16 sps:$4 sm:$0xff]  }
  0x8d   :  { %1662 = vmatpush1.bf16.msra.mxu0 %v2793_v26  ;;  %1826 = vmatpush1.bf16.msra.mxu1 %v2796_v27  ;;  %v2885_v26 = vld [vmem:[#allocation5 + $0x484] ss:$16 sps:$4 sm:$0xff]   ;;  %v2888_v27 = vld [vmem:[#allocation5 + $0x48c] ss:$16 sps:$4 sm:$0xff]  }
  0x8e   :  { %1663 = vmatprep.subr.bf16.mxu0 %v2801_v28  ;;  %1827 = vmatprep.subr.bf16.mxu1 %v2804_v29  ;;  %v2883_v28 = vld [vmem:[#allocation5 + $0x480] ss:$16 sps:$4 sm:$0xff]   ;;  %v2886_v29 = vld [vmem:[#allocation5 + $0x488] ss:$16 sps:$4 sm:$0xff]  }
  0x91   :  { %1664 = vmatpush1.bf16.msra.mxu0 %v2799_v31  ;;  %1828 = vmatpush1.bf16.msra.mxu1 %v2802_v33  ;;  %v2894_v31 = vld [vmem:[#allocation5 + $0x4ac] ss:$16 sps:$4 sm:$0xff]   ;;  %v2892_v33 = vld [vmem:[#allocation5 + $0x4a8] ss:$16 sps:$4 sm:$0xff]  }
  0x92   :  { %1665 = vmatprep.subr.bf16.mxu0 %v2807_v34  ;;  %1829 = vmatprep.subr.bf16.mxu1 %v2810_v35  ;;  %v2897_v34 = vld [vmem:[#allocation5 + $0x4c4] ss:$16 sps:$4 sm:$0xff]   ;;  %v2900_v35 = vld [vmem:[#allocation5 + $0x4cc] ss:$16 sps:$4 sm:$0xff]  }
  0x95   :  { %1666 = vmatpush1.bf16.msra.mxu0 %v2805_v36  ;;  %1830 = vmatpush1.bf16.msra.mxu1 %v2808_v37  ;;  %v2895_v36 = vld [vmem:[#allocation5 + $0x4c0] ss:$16 sps:$4 sm:$0xff]   ;;  %v2898_v37 = vld [vmem:[#allocation5 + $0x4c8] ss:$16 sps:$4 sm:$0xff]  }
  0x96   :  { %1667 = vmatprep.subr.bf16.mxu0 %v2813_v38  ;;  %1831 = vmatprep.subr.bf16.mxu1 %v2816_v39  ;;  %v2903_v38 = vld [vmem:[#allocation5 + $0x4e4] ss:$16 sps:$4 sm:$0xff]   ;;  %v2906_v39 = vld [vmem:[#allocation5 + $0x4ec] ss:$16 sps:$4 sm:$0xff]  }
  0x99   :  { %1668 = vmatpush1.bf16.msra.mxu0 %v2811_v40  ;;  %1832 = vmatpush1.bf16.msra.mxu1 %v2814_v41  ;;  %v2901_v40 = vld [vmem:[#allocation5 + $0x4e0] ss:$16 sps:$4 sm:$0xff]   ;;  %v2904_v41 = vld [vmem:[#allocation5 + $0x4e8] ss:$16 sps:$4 sm:$0xff]  }
  0x9a   :  { %1669 = vmatprep.subr.bf16.mxu0 %v2819_v42  ;;  %1833 = vmatprep.subr.bf16.mxu1 %v2822_v43  ;;  %v2909_v42 = vld [vmem:[#allocation5 + $0x504] ss:$16 sps:$4 sm:$0xff]   ;;  %v2912_v43 = vld [vmem:[#allocation5 + $0x50c] ss:$16 sps:$4 sm:$0xff]  }
  0x9d   :  { %1670 = vmatpush1.bf16.msra.mxu0 %v2817_v44  ;;  %1834 = vmatpush1.bf16.msra.mxu1 %v2820_v45  ;;  %v2907_v44 = vld [vmem:[#allocation5 + $0x500] ss:$16 sps:$4 sm:$0xff]   ;;  %v2910_v45 = vld [vmem:[#allocation5 + $0x508] ss:$16 sps:$4 sm:$0xff]  }
  0x9e   :  { %1671 = vmatprep.subr.bf16.mxu0 %v2825_v46  ;;  %1835 = vmatprep.subr.bf16.mxu1 %v2828_v47  ;;  %v2915_v46 = vld [vmem:[#allocation5 + $0x524] ss:$16 sps:$4 sm:$0xff]   ;;  %v2918_v47 = vld [vmem:[#allocation5 + $0x52c] ss:$16 sps:$4 sm:$0xff]  }
  0xa1   :  { %1672 = vmatpush1.bf16.msra.mxu0 %v2823_v48  ;;  %1836 = vmatpush1.bf16.msra.mxu1 %v2826_v49  ;;  %v2913_v48 = vld [vmem:[#allocation5 + $0x520] ss:$16 sps:$4 sm:$0xff]   ;;  %v2916_v49 = vld [vmem:[#allocation5 + $0x528] ss:$16 sps:$4 sm:$0xff]  }
  0xa2   :  { %1673 = vmatprep.subr.bf16.mxu0 %v2831_v50  ;;  %1837 = vmatprep.subr.bf16.mxu1 %v2834_v51  ;;  %v2921_v50 = vld [vmem:[#allocation5 + $0x544] ss:$16 sps:$4 sm:$0xff]   ;;  %v2924_v51 = vld [vmem:[#allocation5 + $0x54c] ss:$16 sps:$4 sm:$0xff]  }
  0xa5   :  { %1674 = vmatpush1.bf16.msra.mxu0 %v2829_v52  ;;  %1838 = vmatpush1.bf16.msra.mxu1 %v2832_v53  ;;  %v2919_v52 = vld [vmem:[#allocation5 + $0x540] ss:$16 sps:$4 sm:$0xff]   ;;  %v2922_v53 = vld [vmem:[#allocation5 + $0x548] ss:$16 sps:$4 sm:$0xff]  }
  0xa6   :  { %1675 = vmatprep.subr.bf16.mxu0 %v2837_v54  ;;  %1839 = vmatprep.subr.bf16.mxu1 %v2840_v55  ;;  %v2927_v54 = vld [vmem:[#allocation5 + $0x564] ss:$16 sps:$4 sm:$0xff]   ;;  %v2930_v55 = vld [vmem:[#allocation5 + $0x56c] ss:$16 sps:$4 sm:$0xff]  }
  0xa9   :  { %1676 = vmatpush1.bf16.msra.mxu0 %v2835_v56  ;;  %1840 = vmatpush1.bf16.msra.mxu1 %v2838_v57  ;;  %v2925_v56 = vld [vmem:[#allocation5 + $0x560] ss:$16 sps:$4 sm:$0xff]   ;;  %v2928_v57 = vld [vmem:[#allocation5 + $0x568] ss:$16 sps:$4 sm:$0xff]  }
  0xaa   :  { %1677 = vmatprep.subr.bf16.mxu0 %v2843_v58  ;;  %1841 = vmatprep.subr.bf16.mxu1 %v2846_v59  ;;  %v2933_v58 = vld [vmem:[#allocation5 + $0x584] ss:$16 sps:$4 sm:$0xff]   ;;  %v2936_v59 = vld [vmem:[#allocation5 + $0x58c] ss:$16 sps:$4 sm:$0xff]  }
  0xad   :  { %1678 = vmatpush1.bf16.msra.mxu0 %v2841_v60  ;;  %1842 = vmatpush1.bf16.msra.mxu1 %v2844_v61  ;;  %v2931_v60 = vld [vmem:[#allocation5 + $0x580] ss:$16 sps:$4 sm:$0xff]   ;;  %v2934_v61 = vld [vmem:[#allocation5 + $0x588] ss:$16 sps:$4 sm:$0xff]  }
  0xae   :  { %1679 = vmatprep.subr.bf16.mxu0 %v2849_v62  ;;  %1843 = vmatprep.subr.bf16.mxu1 %v2852_v63  ;;  %v2939_v62 = vld [vmem:[#allocation5 + $0x5a4] ss:$16 sps:$4 sm:$0xff]   ;;  %v2942_v63 = vld [vmem:[#allocation5 + $0x5ac] ss:$16 sps:$4 sm:$0xff]  }
  0xb1   :  { %1680 = vmatpush1.bf16.msra.mxu0 %v2847_v0  ;;  %1844 = vmatpush1.bf16.msra.mxu1 %v2850_v1  ;;  %v2937_v0 = vld [vmem:[#allocation5 + $0x5a0] ss:$16 sps:$4 sm:$0xff]   ;;  %v2940_v1 = vld [vmem:[#allocation5 + $0x5a8] ss:$16 sps:$4 sm:$0xff]  }
  0xb2   :  { %1681 = vmatprep.subr.bf16.mxu0 %v2855_v2  ;;  %1845 = vmatprep.subr.bf16.mxu1 %v2858_v3  ;;  %v2945_v2 = vld [vmem:[#allocation5 + $0x5c4] ss:$16 sps:$4 sm:$0xff]   ;;  %v2948_v3 = vld [vmem:[#allocation5 + $0x5cc] ss:$16 sps:$4 sm:$0xff]  }
  0xb5   :  { %1682 = vmatpush1.bf16.msra.mxu0 %v2853_v4  ;;  %1846 = vmatpush1.bf16.msra.mxu1 %v2856_v5  ;;  %v2943_v4 = vld [vmem:[#allocation5 + $0x5c0] ss:$16 sps:$4 sm:$0xff]   ;;  %v2946_v5 = vld [vmem:[#allocation5 + $0x5c8] ss:$16 sps:$4 sm:$0xff]  }
  0xb6   :  { %1692 = vmatprep.subr.bf16.mxu0 %v2861_v6  ;;  %1856 = vmatprep.subr.bf16.mxu1 %v2864_v8  ;;  %v2951_v6 = vld [vmem:[#allocation5 + $0x5e4] ss:$16 sps:$4 sm:$0xff]   ;;  %v2949_v8 = vld [vmem:[#allocation5 + $0x5e0] ss:$16 sps:$4 sm:$0xff]  }
  0xb8   :  { %1684 = vmatmul.mubr.bf16.vlgmr.msra.gmra.mrb[0].mxu0 %v68_v11  ;;  %1848 = vmatmul.mubr.bf16.vlgmr.msra.gmra.mrb[0].mxu1 %v68_v11  ;;  %v62_v11 = vld [vmem:[#allocation2 + $0x20] sm:$0xff] }
  0xb9   :  { %1693 = vmatpush1.bf16.msra.mxu0 %v2859_v9  ;;  %1857 = vmatpush1.bf16.msra.mxu1 %v2862_v10  ;;  %v2952_v9 = vld [vmem:[#allocation5 + $0x5e8] ss:$16 sps:$4 sm:$0xff]   ;;  %v2957_v10 = vld [vmem:[#allocation5 + $0x604] ss:$16 sps:$4 sm:$0xff]  }
  0xba   :  { %1694 = vmatprep.subr.bf16.mxu0 %v2867_v12  ;;  %1858 = vmatprep.subr.bf16.mxu1 %v2870_v13  ;;  %v2960_v12 = vld [vmem:[#allocation5 + $0x60c] ss:$16 sps:$4 sm:$0xff]   ;;  %v2955_v13 = vld [vmem:[#allocation5 + $0x600] ss:$16 sps:$4 sm:$0xff]  }
  0xbb   :  { %1724 = vmatprep.mubr.bf16.mxu0 %v71_v15  ;;  %1888 = vmatprep.mubr.bf16.mxu1 %v71_v15  ;;  %v70_v15 = vpack.c.bf16 %v62_v11, %v62_v11  ;;  %v3050_v11 = vld [vmem:[#allocation5 + $0x7ec] ss:$16 sps:$4 sm:$0xff]  }
  0xbd   :  { %1695 = vmatpush1.bf16.msra.mxu0 %v2865_v16  ;;  %1859 = vmatpush1.bf16.msra.mxu1 %v2868_v17  ;;  %v65_v16 = vld [vmem:[#allocation2 + $0x38] sm:$0xff]  ;;  %v2963_v17 = vld [vmem:[#allocation5 + $0x624] ss:$16 sps:$4 sm:$0xff]  }
  0xbe   :  { %1696 = vmatprep.subr.bf16.mxu0 %v2873_v18  ;;  %1860 = vmatprep.subr.bf16.mxu1 %v2876_v19  ;;  %v2966_v18 = vld [vmem:[#allocation5 + $0x62c] ss:$16 sps:$4 sm:$0xff]   ;;  %v2961_v19 = vld [vmem:[#allocation5 + $0x620] ss:$16 sps:$4 sm:$0xff]  }
  0xc1   :  { %1697 = vmatpush1.bf16.msra.mxu0 %v2871_v20  ;;  %1861 = vmatpush1.bf16.msra.mxu1 %v2874_v21  ;;  %v73_v20 = vpack.c.bf16 %v65_v16, %v65_v16  ;;  %v2964_v21 = vld [vmem:[#allocation5 + $0x628] ss:$16 sps:$4 sm:$0xff]   ;;  %v3052_v16 = vld [vmem:[#allocation7 + $0xc0] sm:$0xff]  }
  0xc2   :  { %1698 = vmatprep.subr.bf16.mxu0 %v2879_v22  ;;  %1862 = vmatprep.subr.bf16.mxu1 %v2882_v23  ;;  %v2969_v22 = vld [vmem:[#allocation5 + $0x644] ss:$16 sps:$4 sm:$0xff]   ;;  %v2972_v23 = vld [vmem:[#allocation5 + $0x64c] ss:$16 sps:$4 sm:$0xff]  }
  0xc5   :  { %1699 = vmatpush1.bf16.msra.mxu0 %v2877_v24  ;;  %1863 = vmatpush1.bf16.msra.mxu1 %v2880_v25  ;;  %v2967_v24 = vld [vmem:[#allocation5 + $0x640] ss:$16 sps:$4 sm:$0xff]   ;;  %v2970_v25 = vld [vmem:[#allocation5 + $0x648] ss:$16 sps:$4 sm:$0xff]  }
  0xc6   :  { %1700 = vmatprep.subr.bf16.mxu0 %v2885_v26  ;;  %1864 = vmatprep.subr.bf16.mxu1 %v2888_v27  ;;  %v2975_v26 = vld [vmem:[#allocation5 + $0x664] ss:$16 sps:$4 sm:$0xff]   ;;  %v2978_v27 = vld [vmem:[#allocation5 + $0x66c] ss:$16 sps:$4 sm:$0xff]  }
  0xc9   :  { %1701 = vmatpush1.bf16.msra.mxu0 %v2883_v28  ;;  %1865 = vmatpush1.bf16.msra.mxu1 %v2886_v29  ;;  %v2973_v28 = vld [vmem:[#allocation5 + $0x660] ss:$16 sps:$4 sm:$0xff]   ;;  %v2976_v29 = vld [vmem:[#allocation5 + $0x668] ss:$16 sps:$4 sm:$0xff]  }
  0xca   :  { %1702 = vmatprep.subr.bf16.mxu0 %v2891_v30  ;;  %1866 = vmatprep.subr.bf16.mxu1 %v2894_v31  ;;  %v2981_v30 = vld [vmem:[#allocation5 + $0x684] ss:$16 sps:$4 sm:$0xff]   ;;  %v2984_v31 = vld [vmem:[#allocation5 + $0x68c] ss:$16 sps:$4 sm:$0xff]  }
  0xcd   :  { %1703 = vmatpush1.bf16.msra.mxu0 %v2889_v32  ;;  %1867 = vmatpush1.bf16.msra.mxu1 %v2892_v33  ;;  %v2979_v32 = vld [vmem:[#allocation5 + $0x680] ss:$16 sps:$4 sm:$0xff]   ;;  %v2982_v33 = vld [vmem:[#allocation5 + $0x688] ss:$16 sps:$4 sm:$0xff]  }
  0xce   :  { %1704 = vmatprep.subr.bf16.mxu0 %v2897_v34  ;;  %1868 = vmatprep.subr.bf16.mxu1 %v2900_v35  ;;  %v2987_v34 = vld [vmem:[#allocation5 + $0x6a4] ss:$16 sps:$4 sm:$0xff]   ;;  %v2990_v35 = vld [vmem:[#allocation5 + $0x6ac] ss:$16 sps:$4 sm:$0xff]  }
  0xd1   :  { %1705 = vmatpush1.bf16.msra.mxu0 %v2895_v36  ;;  %1869 = vmatpush1.bf16.msra.mxu1 %v2898_v37  ;;  %v2985_v36 = vld [vmem:[#allocation5 + $0x6a0] ss:$16 sps:$4 sm:$0xff]   ;;  %v2988_v37 = vld [vmem:[#allocation5 + $0x6a8] ss:$16 sps:$4 sm:$0xff]  }
  0xd2   :  { %1706 = vmatprep.subr.bf16.mxu0 %v2903_v38  ;;  %1870 = vmatprep.subr.bf16.mxu1 %v2906_v39  ;;  %v2993_v38 = vld [vmem:[#allocation5 + $0x6c4] ss:$16 sps:$4 sm:$0xff]   ;;  %v2996_v39 = vld [vmem:[#allocation5 + $0x6cc] ss:$16 sps:$4 sm:$0xff]  }
  0xd5   :  { %1707 = vmatpush1.bf16.msra.mxu0 %v2901_v40  ;;  %1871 = vmatpush1.bf16.msra.mxu1 %v2904_v41  ;;  %v2991_v40 = vld [vmem:[#allocation5 + $0x6c0] ss:$16 sps:$4 sm:$0xff]   ;;  %v2994_v41 = vld [vmem:[#allocation5 + $0x6c8] ss:$16 sps:$4 sm:$0xff]  }
  0xd6   :  { %1708 = vmatprep.subr.bf16.mxu0 %v2909_v42  ;;  %1872 = vmatprep.subr.bf16.mxu1 %v2912_v43  ;;  %v2999_v42 = vld [vmem:[#allocation5 + $0x6e4] ss:$16 sps:$4 sm:$0xff]   ;;  %v3002_v43 = vld [vmem:[#allocation5 + $0x6ec] ss:$16 sps:$4 sm:$0xff]  }
  0xd9   :  { %1709 = vmatpush1.bf16.msra.mxu0 %v2907_v44  ;;  %1873 = vmatpush1.bf16.msra.mxu1 %v2910_v45  ;;  %v2997_v44 = vld [vmem:[#allocation5 + $0x6e0] ss:$16 sps:$4 sm:$0xff]   ;;  %v3000_v45 = vld [vmem:[#allocation5 + $0x6e8] ss:$16 sps:$4 sm:$0xff]  }
  0xda   :  { %1710 = vmatprep.subr.bf16.mxu0 %v2915_v46  ;;  %1874 = vmatprep.subr.bf16.mxu1 %v2918_v47  ;;  %v3005_v46 = vld [vmem:[#allocation5 + $0x704] ss:$16 sps:$4 sm:$0xff]   ;;  %v3008_v47 = vld [vmem:[#allocation5 + $0x70c] ss:$16 sps:$4 sm:$0xff]  }
  0xdd   :  { %1711 = vmatpush1.bf16.msra.mxu0 %v2913_v48  ;;  %1875 = vmatpush1.bf16.msra.mxu1 %v2916_v49  ;;  %v3003_v48 = vld [vmem:[#allocation5 + $0x700] ss:$16 sps:$4 sm:$0xff]   ;;  %v3006_v49 = vld [vmem:[#allocation5 + $0x708] ss:$16 sps:$4 sm:$0xff]  }
  0xde   :  { %1712 = vmatprep.subr.bf16.mxu0 %v2921_v50  ;;  %1876 = vmatprep.subr.bf16.mxu1 %v2924_v51  ;;  %v3011_v50 = vld [vmem:[#allocation5 + $0x724] ss:$16 sps:$4 sm:$0xff]   ;;  %v3014_v51 = vld [vmem:[#allocation5 + $0x72c] ss:$16 sps:$4 sm:$0xff]  }
  0xe1   :  { %1713 = vmatpush1.bf16.msra.mxu0 %v2919_v52  ;;  %1877 = vmatpush1.bf16.msra.mxu1 %v2922_v53  ;;  %v3009_v52 = vld [vmem:[#allocation5 + $0x720] ss:$16 sps:$4 sm:$0xff]   ;;  %v3012_v53 = vld [vmem:[#allocation5 + $0x728] ss:$16 sps:$4 sm:$0xff]  }
  0xe2   :  { %1714 = vmatprep.subr.bf16.mxu0 %v2927_v54  ;;  %1878 = vmatprep.subr.bf16.mxu1 %v2930_v55  ;;  %v3017_v54 = vld [vmem:[#allocation5 + $0x744] ss:$16 sps:$4 sm:$0xff]   ;;  %v3020_v55 = vld [vmem:[#allocation5 + $0x74c] ss:$16 sps:$4 sm:$0xff]  }
  0xe5   :  { %1715 = vmatpush1.bf16.msra.mxu0 %v2925_v56  ;;  %1879 = vmatpush1.bf16.msra.mxu1 %v2928_v57  ;;  %v3015_v56 = vld [vmem:[#allocation5 + $0x740] ss:$16 sps:$4 sm:$0xff]   ;;  %v3018_v57 = vld [vmem:[#allocation5 + $0x748] ss:$16 sps:$4 sm:$0xff]  }
  0xe6   :  { %1716 = vmatprep.subr.bf16.mxu0 %v2933_v58  ;;  %1880 = vmatprep.subr.bf16.mxu1 %v2936_v59  ;;  %v3023_v58 = vld [vmem:[#allocation5 + $0x764] ss:$16 sps:$4 sm:$0xff]   ;;  %v3026_v59 = vld [vmem:[#allocation5 + $0x76c] ss:$16 sps:$4 sm:$0xff]  }
  0xe9   :  { %1717 = vmatpush1.bf16.msra.mxu0 %v2931_v60  ;;  %1881 = vmatpush1.bf16.msra.mxu1 %v2934_v61  ;;  %v3021_v60 = vld [vmem:[#allocation5 + $0x760] ss:$16 sps:$4 sm:$0xff]   ;;  %v3024_v61 = vld [vmem:[#allocation5 + $0x768] ss:$16 sps:$4 sm:$0xff]  }
  0xea   :  { %1718 = vmatprep.subr.bf16.mxu0 %v2939_v62  ;;  %1882 = vmatprep.subr.bf16.mxu1 %v2942_v63  ;;  %v3029_v62 = vld [vmem:[#allocation5 + $0x784] ss:$16 sps:$4 sm:$0xff]   ;;  %v3032_v63 = vld [vmem:[#allocation5 + $0x78c] ss:$16 sps:$4 sm:$0xff]  }
  0xed   :  { %1719 = vmatpush1.bf16.msra.mxu0 %v2937_v0  ;;  %1883 = vmatpush1.bf16.msra.mxu1 %v2940_v1  ;;  %v3027_v0 = vld [vmem:[#allocation5 + $0x780] ss:$16 sps:$4 sm:$0xff]   ;;  %v3030_v1 = vld [vmem:[#allocation5 + $0x788] ss:$16 sps:$4 sm:$0xff]  }
  0xee   :  { %1720 = vmatprep.subr.bf16.mxu0 %v2945_v2  ;;  %1884 = vmatprep.subr.bf16.mxu1 %v2948_v3  ;;  %v3035_v2 = vld [vmem:[#allocation5 + $0x7a4] ss:$16 sps:$4 sm:$0xff]   ;;  %v3038_v3 = vld [vmem:[#allocation5 + $0x7ac] ss:$16 sps:$4 sm:$0xff]  }
  0xf1   :  { %1721 = vmatpush1.bf16.msra.mxu0 %v2943_v4  ;;  %1885 = vmatpush1.bf16.msra.mxu1 %v2946_v5  ;;  %v3033_v4 = vld [vmem:[#allocation5 + $0x7a0] ss:$16 sps:$4 sm:$0xff]   ;;  %v3036_v5 = vld [vmem:[#allocation5 + $0x7a8] ss:$16 sps:$4 sm:$0xff]  }
  0xf2   :  { %1722 = vmatprep.subr.bf16.mxu0 %v2951_v6  ;;  %1886 = vmatprep.subr.bf16.mxu1 %v2954_v7  ;;  %v3041_v6 = vld [vmem:[#allocation5 + $0x7c4] ss:$16 sps:$4 sm:$0xff]   ;;  %v3044_v7 = vld [vmem:[#allocation5 + $0x7cc] ss:$16 sps:$4 sm:$0xff]  }
  0xf5   :  { %1723 = vmatpush1.bf16.msra.mxu0 %v2949_v8  ;;  %1887 = vmatpush1.bf16.msra.mxu1 %v2952_v9  ;;  %v3039_v8 = vld [vmem:[#allocation5 + $0x7c0] ss:$16 sps:$4 sm:$0xff]   ;;  %v3042_v9 = vld [vmem:[#allocation5 + $0x7c8] ss:$16 sps:$4 sm:$0xff]  }
  0xf6   :  { %1733 = vmatprep.subr.bf16.mxu0 %v2957_v10  ;;  %1897 = vmatprep.subr.bf16.mxu1 %v2960_v12  ;;  %v3047_v10 = vld [vmem:[#allocation5 + $0x7e4] ss:$16 sps:$4 sm:$0xff]   ;;  %v3045_v12 = vld [vmem:[#allocation5 + $0x7e0] ss:$16 sps:$4 sm:$0xff]  }
  0xf8   :  { %1725 = vmatmul.mubr.bf16.vlgmr.msra.gmra.mrb[0].mxu0 %v70_v15  ;;  %1889 = vmatmul.mubr.bf16.vlgmr.msra.gmra.mrb[0].mxu1 %v70_v15  ;;  %v3051_v15 = vld [vmem:[#allocation7 + $0x40] sm:$0xff]  }
  0xf9   :  { %1734 = vmatpush1.bf16.msra.mxu0 %v2955_v13  ;;  %1898 = vmatpush1.bf16.msra.mxu1 %v2958_v14  ;;  %v3048_v13 = vld [vmem:[#allocation5 + $0x7e8] ss:$16 sps:$4 sm:$0xff]   ;;  %v64_v14 = vld [vmem:[#allocation2 + $0x30] sm:$0xff] }
  0xfa   :  { %1735 = vmatprep.subr.bf16.mxu0 %v2963_v17  ;;  %1899 = vmatprep.subr.bf16.mxu1 %v2966_v18  ;;  %v72_v17 = vpack.c.bf16 %v64_v14, %v64_v14  ;;  %v3053_v18 = vld [vmem:[#allocation7] sm:$0xff]  }
  0xfb   :  { %1765 = vmatprep.mubr.bf16.mxu0 %v73_v20  ;;  %1929 = vmatprep.mubr.bf16.mxu1 %v73_v20  ;;  %v3055_v20 = vld [vmem:[#allocation7 + $0x48] sm:$0xff]  }
  0xfd   :  { %1736 = vmatpush1.bf16.msra.mxu0 %v2961_v19  ;;  %1900 = vmatpush1.bf16.msra.mxu1 %v2964_v21  ;;  %v3054_v19 = vld [vmem:[#allocation7 + $0x80] sm:$0xff]   ;;  %v3056_v21 = vld [vmem:[#allocation7 + $0xc8] sm:$0xff]  }
  0xfe   :  { %1737 = vmatprep.subr.bf16.mxu0 %v2969_v22  ;;  %1901 = vmatprep.subr.bf16.mxu1 %v2972_v23  ;;  %v3057_v22 = vld [vmem:[#allocation7 + $0x8] sm:$0xff]  }
  0xff   :  { %v3058_v23 = vld [vmem:[#allocation7 + $0x88] sm:$0xff]  }
 0x101   :  { %1738 = vmatpush1.bf16.msra.mxu0 %v2967_v24  ;;  %1902 = vmatpush1.bf16.msra.mxu1 %v2970_v25  ;;  %v3059_v24 = vld [vmem:[#allocation7 + $0x50] sm:$0xff]  }
 0x102   :  { %1739 = vmatprep.subr.bf16.mxu0 %v2975_v26  ;;  %1903 = vmatprep.subr.bf16.mxu1 %v2978_v27  ;;  %v3060_v25 = vld [vmem:[#allocation7 + $0xd0] sm:$0xff]  }
 0x103   :  { %v3061_v26 = vld [vmem:[#allocation7 + $0x10] sm:$0xff]  }
 0x104   :  { %v3062_v27 = vld [vmem:[#allocation7 + $0x90] sm:$0xff]  }
 0x105   :  { %1740 = vmatpush1.bf16.msra.mxu0 %v2973_v28  ;;  %1904 = vmatpush1.bf16.msra.mxu1 %v2976_v29  ;;  %v3063_v28 = vld [vmem:[#allocation7 + $0x58] sm:$0xff]  }
 0x106   :  { %1741 = vmatprep.subr.bf16.mxu0 %v2981_v30  ;;  %1905 = vmatprep.subr.bf16.mxu1 %v2984_v31  ;;  %v3064_v29 = vld [vmem:[#allocation7 + $0xd8] sm:$0xff]  }
 0x107   :  { %v3065_v30 = vld [vmem:[#allocation7 + $0x18] sm:$0xff]  }
 0x108   :  { %v3066_v31 = vld [vmem:[#allocation7 + $0x98] sm:$0xff]  }
 0x109   :  { %1742 = vmatpush1.bf16.msra.mxu0 %v2979_v32  ;;  %1906 = vmatpush1.bf16.msra.mxu1 %v2982_v33  ;;  %v3067_v32 = vld [vmem:[#allocation7 + $0x60] sm:$0xff]  }
 0x10a   :  { %1743 = vmatprep.subr.bf16.mxu0 %v2987_v34  ;;  %1907 = vmatprep.subr.bf16.mxu1 %v2990_v35  ;;  %v3068_v33 = vld [vmem:[#allocation7 + $0xe0] sm:$0xff]  }
 0x10b   :  { %v3069_v34 = vld [vmem:[#allocation7 + $0x20] sm:$0xff]  }
 0x10c   :  { %v3070_v35 = vld [vmem:[#allocation7 + $0xa0] sm:$0xff]  }
 0x10d   :  { %1744 = vmatpush1.bf16.msra.mxu0 %v2985_v36  ;;  %1908 = vmatpush1.bf16.msra.mxu1 %v2988_v37  ;;  %v3071_v36 = vld [vmem:[#allocation7 + $0x68] sm:$0xff]  }
 0x10e   :  { %1745 = vmatprep.subr.bf16.mxu0 %v2993_v38  ;;  %1909 = vmatprep.subr.bf16.mxu1 %v2996_v39  ;;  %v3072_v37 = vld [vmem:[#allocation7 + $0xe8] sm:$0xff]  }
 0x10f   :  { %v3073_v38 = vld [vmem:[#allocation7 + $0x28] sm:$0xff]  }
 0x110   :  { %v3074_v39 = vld [vmem:[#allocation7 + $0xa8] sm:$0xff]  }
 0x111   :  { %1746 = vmatpush1.bf16.msra.mxu0 %v2991_v40  ;;  %1910 = vmatpush1.bf16.msra.mxu1 %v2994_v41  ;;  %v3075_v40 = vld [vmem:[#allocation7 + $0x70] sm:$0xff]  }
 0x112   :  { %1747 = vmatprep.subr.bf16.mxu0 %v2999_v42  ;;  %1911 = vmatprep.subr.bf16.mxu1 %v3002_v43  ;;  %v3076_v41 = vld [vmem:[#allocation7 + $0xf0] sm:$0xff]  }
 0x113   :  { %v3077_v42 = vld [vmem:[#allocation7 + $0x30] sm:$0xff]  }
 0x114   :  { %v3078_v43 = vld [vmem:[#allocation7 + $0xb0] sm:$0xff]  }
 0x115   :  { %1748 = vmatpush1.bf16.msra.mxu0 %v2997_v44  ;;  %1912 = vmatpush1.bf16.msra.mxu1 %v3000_v45  ;;  %v3079_v44 = vld [vmem:[#allocation7 + $0x78] sm:$0xff]  }
 0x116   :  { %1749 = vmatprep.subr.bf16.mxu0 %v3005_v46  ;;  %1913 = vmatprep.subr.bf16.mxu1 %v3008_v47  ;;  %v3080_v45 = vld [vmem:[#allocation7 + $0xf8] sm:$0xff]  }
 0x117   :  { %v3081_v46 = vld [vmem:[#allocation7 + $0x38] sm:$0xff]  }
 0x118   :  { %v3082_v47 = vld [vmem:[#allocation7 + $0xb8] sm:$0xff]  }
 0x119   :  { %1750 = vmatpush1.bf16.msra.mxu0 %v3003_v48  ;;  %1914 = vmatpush1.bf16.msra.mxu1 %v3006_v49 }
 0x11a   :  { %1751 = vmatprep.subr.bf16.mxu0 %v3011_v50  ;;  %1915 = vmatprep.subr.bf16.mxu1 %v3014_v51 }
 0x11d   :  { %1752 = vmatpush1.bf16.msra.mxu0 %v3009_v52  ;;  %1916 = vmatpush1.bf16.msra.mxu1 %v3012_v53 }
 0x11e   :  { %1753 = vmatprep.subr.bf16.mxu0 %v3017_v54  ;;  %1917 = vmatprep.subr.bf16.mxu1 %v3020_v55 }
 0x121   :  { %1754 = vmatpush1.bf16.msra.mxu0 %v3015_v56  ;;  %1918 = vmatpush1.bf16.msra.mxu1 %v3018_v57 }
 0x122   :  { %1755 = vmatprep.subr.bf16.mxu0 %v3023_v58  ;;  %1919 = vmatprep.subr.bf16.mxu1 %v3026_v59 }
 0x125   :  { %1756 = vmatpush1.bf16.msra.mxu0 %v3021_v60  ;;  %1920 = vmatpush1.bf16.msra.mxu1 %v3024_v61 }
 0x126   :  { %1757 = vmatprep.subr.bf16.mxu0 %v3029_v62  ;;  %1921 = vmatprep.subr.bf16.mxu1 %v3032_v63  ;;  %v2558_v62 = vld [vmem:[%s3264_s3] ss:$0 sm:$0xff] }
 0x129   :  { %1758 = vmatpush1.bf16.msra.mxu0 %v3027_v0  ;;  %1922 = vmatpush1.bf16.msra.mxu1 %v3030_v1 }
 0x12a   :  { %1759 = vmatprep.subr.bf16.mxu0 %v3035_v2  ;;  %1923 = vmatprep.subr.bf16.mxu1 %v3038_v3 }
 0x12d   :  { %1760 = vmatpush1.bf16.msra.mxu0 %v3033_v4  ;;  %1924 = vmatpush1.bf16.msra.mxu1 %v3036_v5 }
 0x12e   :  { %1761 = vmatprep.subr.bf16.mxu0 %v3041_v6  ;;  %1925 = vmatprep.subr.bf16.mxu1 %v3044_v7 }
 0x131   :  { %1762 = vmatpush1.bf16.msra.mxu0 %v3039_v8  ;;  %1926 = vmatpush1.bf16.msra.mxu1 %v3042_v9 }
 0x132   :  { %1763 = vmatprep.subr.bf16.mxu0 %v3047_v10  ;;  %1927 = vmatprep.subr.bf16.mxu1 %v3050_v11 }
 0x135   :  { %1764 = vmatpush1.bf16.msra.mxu0 %v3045_v12  ;;  %1928 = vmatpush1.bf16.msra.mxu1 %v3048_v13 }
 0x136   :  { %2591 = vmatprep.subr.bf16.mxu0 %v3051_v15  ;;  %2613 = vmatprep.subr.bf16.mxu1 %v3052_v16 }
 0x138   :  { %1766 = vmatmul.mubr.bf16.vlgmr.msra.gmra.mrb[0].mxu0 %v72_v17  ;;  %1930 = vmatmul.mubr.bf16.vlgmr.msra.gmra.mrb[0].mxu1 %v72_v17 }
 0x139   :  { %2592 = vmatpush3.bf16.msra.mxu0 %v3053_v18  ;;  %2614 = vmatpush3.bf16.msra.mxu1 %v3054_v19 }
 0x13a   :  { %2593 = vmatprep.subr.bf16.mxu0 %v3055_v20  ;;  %2615 = vmatprep.subr.bf16.mxu1 %v3056_v21 }
 0x13d   :  { %2594 = vmatpush3.bf16.msra.mxu0 %v3057_v22  ;;  %2616 = vmatpush3.bf16.msra.mxu1 %v3058_v23 }
 0x13e   :  { %2595 = vmatprep.subr.bf16.mxu0 %v3059_v24  ;;  %2617 = vmatprep.subr.bf16.mxu1 %v3060_v25 }
 0x141   :  { %2596 = vmatpush3.bf16.msra.mxu0 %v3061_v26  ;;  %2618 = vmatpush3.bf16.msra.mxu1 %v3062_v27 }
 0x142   :  { %2597 = vmatprep.subr.bf16.mxu0 %v3063_v28  ;;  %2619 = vmatprep.subr.bf16.mxu1 %v3064_v29 }
 0x145   :  { %2598 = vmatpush3.bf16.msra.mxu0 %v3065_v30  ;;  %2620 = vmatpush3.bf16.msra.mxu1 %v3066_v31 }
 0x146   :  { %2599 = vmatprep.subr.bf16.mxu0 %v3067_v32  ;;  %2621 = vmatprep.subr.bf16.mxu1 %v3068_v33 }
 0x149   :  { %2600 = vmatpush3.bf16.msra.mxu0 %v3069_v34  ;;  %2622 = vmatpush3.bf16.msra.mxu1 %v3070_v35 }
 0x14a   :  { %2601 = vmatprep.subr.bf16.mxu0 %v3071_v36  ;;  %2623 = vmatprep.subr.bf16.mxu1 %v3072_v37 }
 0x14d   :  { %2602 = vmatpush3.bf16.msra.mxu0 %v3073_v38  ;;  %2624 = vmatpush3.bf16.msra.mxu1 %v3074_v39 }
 0x14e   :  { %2603 = vmatprep.subr.bf16.mxu0 %v3075_v40  ;;  %2625 = vmatprep.subr.bf16.mxu1 %v3076_v41 }
 0x151   :  { %2604 = vmatpush3.bf16.msra.mxu0 %v3077_v42  ;;  %2626 = vmatpush3.bf16.msra.mxu1 %v3078_v43 }
 0x152   :  { %2605 = vmatprep.subr.bf16.mxu0 %v3079_v44  ;;  %2627 = vmatprep.subr.bf16.mxu1 %v3080_v45 }
 0x155   :  { %2606 = vmatpush3.bf16.msra.mxu0 %v3081_v46  ;;  %2628 = vmatpush3.bf16.msra.mxu1 %v3082_v47 }
 0x20b   :  { %v1767_v48 = vpop.f32.mrb[0].mxu0  ;;  %v1931_v49 = vpop.f32.mrb[0].mxu1 }
 0x20c   :  { %v1769_v50 = vpop.f32.mrb[1].mxu0  ;;  %v1933_v51 = vpop.f32.mrb[1].mxu1  ;;  %v1938_v56 = vpack.c.bf16 %v1767_v48, %v1767_v48  ;;  %v1940_v57 = vpack.c.bf16 %v1931_v49, %v1931_v49 }
 0x20d   :  { %v1939_v52 = vpack.c.bf16 %v1769_v50, %v1769_v50  ;;  %v1941_v53 = vpack.c.bf16 %v1933_v51, %v1933_v51  ;;  %v1771_v54 = vpop.f32.mrb[2].mxu0  ;;  %v1935_v55 = vpop.f32.mrb[2].mxu1 }
 0x20e   :  { %v1772_v58 = vpop.f32.mrb[3].mxu0  ;;  %v1936_v59 = vpop.f32.mrb[3].mxu1 }
 0x20f   :  { %2237 = vmatprep.mubr.bf16.mxu0 %v1939_v52  ;;  %2277 = vmatprep.mubr.bf16.mxu1 %v1941_v53 }
 0x210   :  { %2238 = vmatmul.mubr.bf16.vlgmr.msra.gmra.mrb[4].mxu0 %v1938_v56  ;;  %2278 = vmatmul.mubr.bf16.vlgmr.msra.gmra.mrb[4].mxu1 %v1940_v57 }
 0x2e3   :  { %v2607_v60 = vpop.f32.mrb[4].mxu0  ;;  %v2629_v61 = vpop.f32.mrb[4].mxu1 }
 0x2e4   :  { %v2608_v63 = vpop.f32.mrb[5].mxu0  ;;  %v2630_v0 = vpop.f32.mrb[5].mxu1 }
 0x2e5   :  { %v2609_v1 = vadd.f32 %v2608_v63, %v2607_v60  ;;  %v2631_v2 = vadd.f32 %v2630_v0, %v2629_v61  ;;  %v2610_v3 = vpop.f32.mrb[6].mxu0  ;;  %v2632_v4 = vpop.f32.mrb[6].mxu1 }
 0x2e6   :  { %v2611_v5 = vpop.f32.mrb[7].mxu0  ;;  %v2633_v6 = vpop.f32.mrb[7].mxu1 }
 0x2e7   :  { %v2240_v7 = vadd.f32 %v2609_v1, %v2558_v62 }
 0x2e9   :  { %v2280_v8 = vadd.f32 %v2631_v2, %v2240_v7 }
 0x2eb   :  { %2285 = vst [vmem:[#allocation8] sm:$0xff] %v2280_v8 }
 0x2ec   :  { %3160 = shalt.err (!%p3157_p0)
}
 0x2ed   :  { %s3161_s6 = scalar_lea.hbm %s3265_s4, 128 }
 0x2ee   :  { %p3162_p1 = scmp.ne.s32.totalorder %s3265_s4, %s3161_s6  ;;  %p3165_p2 = scmp.lt.u32.totalorder %s3161_s6, %s3265_s4 }
 0x2f0   :  { %p3167_p3 = pnand %p3165_p2, %p3162_p1 }
 0x2f2   :  { %3170 = shalt.err (!%p3167_p3)
}
 0x2f3   :  { %2295 = dma.vmem_to_hbm [thread:$0]  %s2293_s29, 128, %s3265_s4, [#allocation4]  }
 0x2f4   :  { %3175 = dma.done.wait [#allocation4], 128  }
 0x2f5   :  { %3176 = vsyncadd [#allocation4], 4294967168 }
 0x2f6   :  { %2299 = vsyncpa [#allocation3], 1 }
 0x2f7   :  { %2300 = vsyncpa [#allocation6], 1 }
 0x2f8   :  { %2301 = vsyncpa [#allocation4], 1 }

</bundles_post_ra>
